<compile_context>
chip_gen: v7x
topology: tpu7x:2x2x1
jax: 0.10.0
libtpu: 0.0.40
codegen_flags: <defaults>
</compile_context>

<pallas_src>
import functools

import numpy as np
import jax
import jax.numpy as jnp
from jax import lax
from jax.experimental import pallas as pl
from jax.experimental.pallas import tpu as pltpu

V_TH = 0.5          # braincog IFNode ('lif') firing threshold (reconstructed)
LANE = 128          # TPU lane width; activity register / weight blocks are 128-lane dense
NUM_BLOCKS = 6      # fused stages: DLPFC | StrD1/StrD2/STN/thal-partial | Gpe | Gpi | thal | PM


def lane_offsets(S, A):
    """Lane layout of the packed activity register (== packed spike / recurrent-state layout)."""
    SA = S * A
    off = {
        "s0": 0,                   # StrD1
        "s1": SA,                  # StrD2
        "s2": 2 * SA,              # STN
        "s3": 3 * SA,              # Gpe
        "s4": 3 * SA + A,          # Gpi
        "s5": 3 * SA + 2 * A,      # thalamus
        "s6": 3 * SA + 3 * A,      # PM
        "s7": 3 * SA + 4 * A,      # DLPFC
        "x":  3 * SA + 4 * A + S,  # external one-hot state input
    }
    assert off["x"] + S <= LANE, "packed layout needs 3*S*A + 4*A + 2*S <= 128"
    return off


def make_bdmsnn_weights(num_state, num_action, weight_exc, weight_inh):
    """Deterministic structural weights, mirroring BDMSNN.__init__ / basalganglia."""
    S, A = num_state, num_action
    SA = S * A
    m0 = np.zeros((S, SA), np.float32)                 # state -> its S*A state-action block
    for i in range(S):
        m0[i, i * A:(i + 1) * A] = 1.0
    m2 = np.zeros((SA, A), np.float32)                 # state-action -> action populations
    for i in range(S):
        m2[i * A:(i + 1) * A, :] = np.eye(A, dtype=np.float32)
    ones_sa_a = np.ones((SA, A), np.float32)
    eye_a = np.eye(A, dtype=np.float32)
    eye_s = np.eye(S, dtype=np.float32)
    we, wi = float(weight_exc), float(weight_inh)
    return [
        we * m0,                                           # 0  DLPFC -> StrD1
        we * m0,                                           # 1  DLPFC -> StrD2
        we * m0,                                           # 2  DLPFC -> STN
        wi * m2,                                           # 3  StrD1 -> Gpi (inh)
        wi * m2,                                           # 4  StrD2 -> Gpe (inh)
        we * ones_sa_a,                                    # 5  STN   -> Gpe (diffuse exc)
        wi * eye_a,                                        # 6  Gpe   -> Gpi (inh)
        we * ones_sa_a,                                    # 7  STN   -> Gpi (diffuse exc)
        wi * np.ascontiguousarray(m2.T),                   # 8  Gpe   -> STN (inh)
        we * eye_s,                                        # 9  input -> DLPFC      (con_matrix9)
        wi * eye_a,                                        # 10 Gpi   -> thalamus   (inh)
        we * eye_a,                                        # 11 thalamus -> PM      (exc)
        0.2 * we * np.ones((S, A), np.float32),            # 12 DLPFC -> thalamus   (con_matrix11)
        5.0 * wi * (np.ones((A, A), np.float32) - eye_a),  # 13 PM lateral inhibition (con_matrix5)
    ]


def pack_weight_slab(weights, S, A):
    """Pack all 14 connection matrices into 6 stacked (128,128) blocks -> one (768,128) slab.

    Rows and columns of every block use the activity-register lane coordinate system, so each
    forward stage is act(B,128) @ block(128,128): rows for lanes that do not feed the stage are
    zero, and unused output lanes are zero (the kernel masks them away anyway).
    """
    W = [np.asarray(w, np.float32) for w in weights]
    o = lane_offsets(S, A)
    slab = np.zeros((NUM_BLOCKS * LANE, LANE), np.float32)

    def put(blk, row_key, col_key, mat):
        r = blk * LANE + o[row_key]
        c = o[col_key]
        slab[r:r + mat.shape[0], c:c + mat.shape[1]] = mat

    put(0, "x",  "s7", W[9])    # input -> DLPFC
    put(1, "s7", "s0", W[0])    # DLPFC -> StrD1
    put(1, "s7", "s1", W[1])    # DLPFC -> StrD2
    put(1, "s7", "s2", W[2])    # DLPFC -> STN
    put(1, "s7", "s5", W[12])   # DLPFC -> thalamus (raw-current partial, added at stage 5)
    put(1, "s3", "s2", W[8])    # Gpe(prev) -> STN
    put(2, "s1", "s3", W[4])    # StrD2 -> Gpe
    put(2, "s2", "s3", W[5])    # STN   -> Gpe
    put(3, "s0", "s4", W[3])    # StrD1 -> Gpi
    put(3, "s3", "s4", W[6])    # Gpe   -> Gpi
    put(3, "s2", "s4", W[7])    # STN   -> Gpi
    put(4, "s4", "s5", W[10])   # Gpi   -> thalamus
    put(5, "s5", "s6", W[11])   # thalamus -> PM
    put(5, "s6", "s6", W[13])   # PM(prev) lateral inhibition
    # TODO(synk): a bf16 slab + bf16 activity register would hit the native MXU input rate;
    #             kept f32 so the 0.2*weight_exc (=0.6) DLPFC->thalamus threshold margin is exact.
    return jnp.asarray(slab)


def make_bdmsnn_kernel(S, A, b_tile):
    o = lane_offsets(S, A)
    SA = S * A

    def kernel(state0_ref, x_ref, w_ref, spikes_ref, dw_ref, act_ref):
        t = pl.program_id(1)

        @pl.when(t == 0)
        def _():
            # new batch tile: load initial recurrent state, zero the dw accumulators
            act_ref[...] = state0_ref[...]
            dw_ref[...] = jnp.zeros_like(dw_ref)

        lane = lax.broadcasted_iota(jnp.int32, (b_tile, LANE), 1)
        span = lambda key, w: (lane >= o[key]) & (lane < o[key] + w)
        fire = lambda cur: (cur > V_TH).astype(jnp.float32)
        dot = lambda a, k: jnp.dot(a, w_ref[k * LANE:(k + 1) * LANE, :],
                                   preferred_element_type=jnp.float32)
        outer = lambda a, b: lax.dot_general(a, b, (((0,), (0,)), ((), ())),
                                             preferred_element_type=jnp.float32)

        act_prev = act_ref[...]                              # previous-step spikes (recurrent state)
        act = jnp.where(span("x", S), x_ref[0], act_prev)    # inject this step's one-hot input

        # 6-stage serial forward chain; each stage is one (B,128)@(128,128) MXU dot and a
        # lane-masked select into the activity register (no concats, no sub-lane weight slices).
        act = jnp.where(span("s7", S), fire(dot(act, 0)), act)        # DLPFC
        z = dot(act, 1)                                               # StrD1|StrD2|STN currents + DLPFC->thal partial
        act = jnp.where(span("s0", 3 * SA), fire(z), act)             # StrD1, StrD2, STN (uses prev-Gpe lanes)
        act = jnp.where(span("s3", A), fire(dot(act, 2)), act)        # Gpe
        act = jnp.where(span("s4", A), fire(dot(act, 3)), act)        # Gpi
        act = jnp.where(span("s5", A), fire(dot(act, 4) + z), act)    # thalamus (+ DLPFC->thal partial)
        act = jnp.where(span("s6", A), fire(dot(act, 5)), act)        # PM (reads prev-PM lanes before overwrite)

        act_ref[...] = act            # carry recurrent state to the next timestep
        spikes_ref[0] = act           # packed spike output == activity register (lane-dense store)

        # All 13 STDP outer products as TWO (128,128) MXU accumulations (summed over the agents
        # of this batch tile and over time; written back once when the batch tile changes):
        #   dw_ref[0,0]: pre = current-step spikes;  dw_ref[0,1]: pre = previous-step spikes
        #   (needed for the Gpe(prev)->STN and PM(prev) lateral STDP terms).
        dw_ref[0, 0, :, :] += outer(act, act)
        dw_ref[0, 1, :, :] += outer(act_prev, act)

    return kernel


@functools.partial(jax.jit, static_argnames=("b_tile",))
def bdmsnn_rollout(x_seq, gpe0, pm0, w_slab, *, b_tile=8):
    """Run T timesteps of the BDMSNN forward for B agents in one pallas_call.

    x_seq : (T, B, S) one-hot state inputs.
    gpe0  : (B, A) previous Gpe spikes (module's self.out[3] before the first step).
    pm0   : (B, A) previous PM  spikes (module's self.out[6] before the first step).

    Returns (pm_out, dw, spikes_packed):
      pm_out        : (T, B, A) PM spikes per step (the module's return value out[6]).
      dw            : tuple mirroring self.dw[0..6], each summed over agents and timesteps.
      spikes_packed : (T, B, 128) packed activity register per step; spikes_packed[-1] has the
                      same lane layout as the initial state, so chained calls are repack-free.
    """
    T, B, S = x_seq.shape
    A = gpe0.shape[-1]
    SA = S * A
    assert B % b_tile == 0 and b_tile % 8 == 0 and b_tile <= 128
    bt = B // b_tile
    o = lane_offsets(S, A)

    x_packed = jnp.zeros((T, B, LANE), jnp.float32).at[:, :, o["x"]:o["x"] + S].set(
        x_seq.astype(jnp.float32))
    state0 = (jnp.zeros((B, LANE), jnp.float32)
              .at[:, o["s3"]:o["s3"] + A].set(gpe0.astype(jnp.float32))
              .at[:, o["s6"]:o["s6"] + A].set(pm0.astype(jnp.float32)))

    spikes, dw_packed = pl.pallas_call(
        make_bdmsnn_kernel(S, A, b_tile),
        out_shape=(jax.ShapeDtypeStruct((T, B, LANE), jnp.float32),
                   jax.ShapeDtypeStruct((bt, 2, LANE, LANE), jnp.float32)),
        grid=(bt, T),
        in_specs=[
            pl.BlockSpec((b_tile, LANE), lambda b, t: (b, 0)),             # initial packed state
            pl.BlockSpec((1, b_tile, LANE), lambda b, t: (t, b, 0)),       # per-step packed input
            pl.BlockSpec((NUM_BLOCKS * LANE, LANE), lambda b, t: (0, 0)),  # weight slab (VMEM-resident)
        ],
        out_specs=(
            pl.BlockSpec((1, b_tile, LANE), lambda b, t: (t, b, 0)),       # per-step packed spikes
            pl.BlockSpec((1, 2, LANE, LANE), lambda b, t: (b, 0, 0, 0)),   # dw accumulators
        ),
        scratch_shapes=[pltpu.VMEM((b_tile, LANE), jnp.float32)],          # carried activity register
        compiler_params=pltpu.CompilerParams(
            dimension_semantics=("parallel", "arbitrary")),
    )(state0, x_packed, w_slab)

    # sum dw over batch tiles (already summed over agents within a tile and over time)
    dw_main = dw_packed[:, 0].sum(axis=0)
    dw_prev = dw_packed[:, 1].sum(axis=0)

    def sub(m, rk, rw, ck, cw):
        return m[o[rk]:o[rk] + rw, o[ck]:o[ck] + cw]

    dw = (
        sub(dw_main, "s7", S, "s0", SA),                                        # dw[0] DLPFC->StrD1
        sub(dw_main, "s7", S, "s1", SA),                                        # dw[1] DLPFC->StrD2
        (sub(dw_main, "s7", S, "s2", SA), sub(dw_prev, "s3", A, "s2", SA)),     # dw[2] (DLPFC, Gpe_prev)->STN
        (sub(dw_main, "s1", SA, "s3", A), sub(dw_main, "s2", SA, "s3", A)),     # dw[3] (StrD2, STN)->Gpe
        (sub(dw_main, "s0", SA, "s4", A), sub(dw_main, "s3", A, "s4", A),
         sub(dw_main, "s2", SA, "s4", A)),                                      # dw[4] (StrD1, Gpe, STN)->Gpi
        (sub(dw_main, "s4", A, "s5", A), sub(dw_main, "s7", S, "s5", A)),       # dw[5] (Gpi, DLPFC)->thalamus
        (sub(dw_main, "s5", A, "s6", A), sub(dw_prev, "s6", A, "s6", A)),       # dw[6] (thalamus, PM_prev)->PM
    )
    # dw[7] (learning_rule[7]) is never invoked by the module's forward -> omitted (stays zero).
    pm_out = spikes[:, :, o["s6"]:o["s6"] + A]
    return pm_out, dw, spikes


# --------------------------- pure-numpy reference & checks ---------------------------

def unpack_spikes(spikes_packed, S, A):
    o = lane_offsets(S, A)
    SA = S * A
    widths = {"s0": SA, "s1": SA, "s2": SA, "s3": A, "s4": A, "s5": A, "s6": A, "s7": S}
    sp = np.asarray(spikes_packed)
    return {k: sp[..., o[k]:o[k] + w] for k, w in widths.items()}


def reference_rollout(x_seq, gpe0, pm0, W):
    """Numpy replay of the same multi-step forward (batch-vectorized), for correctness checking."""
    fire = lambda c: (np.asarray(c) > V_TH).astype(np.float32)
    Wn = [np.asarray(w, np.float32) for w in W]
    T, B, S = x_seq.shape
    A = gpe0.shape[-1]
    SA = S * A
    gpe = np.asarray(gpe0, np.float32).copy()
    pm = np.asarray(pm0, np.float32).copy()
    names = ("s0", "s1", "s2", "s3", "s4", "s5", "s6", "s7")
    sp = {k: [] for k in names}
    acc = {"dw0": np.zeros((S, SA)), "dw1": np.zeros((S, SA)),
           "dw2a": np.zeros((S, SA)), "dw2b": np.zeros((A, SA)),
           "dw3a": np.zeros((SA, A)), "dw3b": np.zeros((SA, A)),
           "dw4a": np.zeros((SA, A)), "dw4b": np.zeros((A, A)), "dw4c": np.zeros((SA, A)),
           "dw5a": np.zeros((A, A)), "dw5b": np.zeros((S, A)),
           "dw6a": np.zeros((A, A)), "dw6b": np.zeros((A, A))}
    for t in range(T):
        x = np.asarray(x_seq[t], np.float32)
        s7 = fire(x @ Wn[9])
        s0 = fire(s7 @ Wn[0])
        s1 = fire(s7 @ Wn[1])
        s2 = fire(s7 @ Wn[2] + gpe @ Wn[8])
        s3 = fire(s1 @ Wn[4] + s2 @ Wn[5])
        s4 = fire(s0 @ Wn[3] + s3 @ Wn[6] + s2 @ Wn[7])
        s5 = fire(s4 @ Wn[10] + s7 @ Wn[12])
        s6 = fire(s5 @ Wn[11] + pm @ Wn[13])
        acc["dw0"] += s7.T @ s0; acc["dw1"] += s7.T @ s1
        acc["dw2a"] += s7.T @ s2; acc["dw2b"] += gpe.T @ s2
        acc["dw3a"] += s1.T @ s3; acc["dw3b"] += s2.T @ s3
        acc["dw4a"] += s0.T @ s4; acc["dw4b"] += s3.T @ s4; acc["dw4c"] += s2.T @ s4
        acc["dw5a"] += s4.T @ s5; acc["dw5b"] += s7.T @ s5
        acc["dw6a"] += s5.T @ s6; acc["dw6b"] += pm.T @ s6
        for k, v in zip(names, (s0, s1, s2, s3, s4, s5, s6, s7)):
            sp[k].append(v)
        gpe, pm = s3, s6
    return {k: np.stack(v) for k, v in sp.items()}, acc


def check(x_seq, gpe0, pm0, weights, pm_out, dw, spikes_packed):
    S = x_seq.shape[-1]
    A = gpe0.shape[-1]
    ref_sp, ref_dw = reference_rollout(np.asarray(x_seq), np.asarray(gpe0),
                                       np.asarray(pm0), weights)
    got_sp = unpack_spikes(spikes_packed, S, A)
    for k in ref_sp:
        np.testing.assert_array_equal(got_sp[k], ref_sp[k])
    np.testing.assert_array_equal(np.asarray(pm_out), ref_sp["s6"])
    got_flat = [dw[0], dw[1], dw[2][0], dw[2][1], dw[3][0], dw[3][1],
                dw[4][0], dw[4][1], dw[4][2], dw[5][0], dw[5][1], dw[6][0], dw[6][1]]
    names = ["dw0", "dw1", "dw2a", "dw2b", "dw3a", "dw3b",
             "dw4a", "dw4b", "dw4c", "dw5a", "dw5b", "dw6a", "dw6b"]
    for g, n in zip(got_flat, names):
        np.testing.assert_array_equal(np.asarray(g), ref_dw[n].astype(np.float32))


if __name__ == "__main__":
    num_state, num_action = 8, 4
    weight_exc, weight_inh = 3.0, -3.0
    B, T, B_TILE = 16, 16, 8      # two batch tiles -> exercises the "parallel" grid axis

    weights = make_bdmsnn_weights(num_state, num_action, weight_exc, weight_inh)
    w_slab = pack_weight_slab(weights, num_state, num_action)

    key = jax.random.PRNGKey(0)
    k1, k2, k3 = jax.random.split(key, 3)
    state_idx = jax.random.randint(k1, (T, B), 0, num_state)
    x_seq = jax.nn.one_hot(state_idx, num_state, dtype=jnp.float32)   # (T, B, S) one-hot inputs

    # rollout 1: module's initial recurrent state (out[3] = out[6] = zeros, as in BDMSNN.__init__)
    gpe0 = jnp.zeros((B, num_action), jnp.float32)
    pm0 = jnp.zeros((B, num_action), jnp.float32)
    pm_out, dw, spikes = bdmsnn_rollout(x_seq, gpe0, pm0, w_slab, b_tile=B_TILE)
    jax.block_until_ready(spikes)
    check(x_seq, gpe0, pm0, weights, pm_out, dw, spikes)

    # rollout 2: nonzero recurrent state (exercises Gpe->STN feedback and PM lateral inhibition).
    # Note: spikes[-1] from a previous rollout can be fed straight back as the packed initial
    # state (identical lane layout), making chained calls round-trip free.
    gpe1 = (jax.random.uniform(k2, (B, num_action)) > 0.5).astype(jnp.float32)
    pm1 = (jax.random.uniform(k3, (B, num_action)) > 0.5).astype(jnp.float32)
    pm_out2, dw2, spikes2 = bdmsnn_rollout(x_seq[:2], gpe1, pm1, w_slab, b_tile=B_TILE)
    jax.block_until_ready(spikes2)
    check(x_seq[:2], gpe1, pm1, weights, pm_out2, dw2, spikes2)

    print("KERNEL_OK")
</pallas_src>

<mosaic_0001>
module attributes {stable_mosaic.version = 11 : i64} {
  func.func @kernel(%arg0: i32, %arg1: i32, %arg2: memref<8x128xf32, #tpu.memory_space<vmem>>, %arg3: memref<1x8x128xf32, #tpu.memory_space<vmem>>, %arg4: memref<768x128xf32, #tpu.memory_space<vmem>>, %arg5: memref<1x8x128xf32, #tpu.memory_space<vmem>>, %arg6: memref<1x2x128x128xf32, #tpu.memory_space<vmem>>, %arg7: memref<8x128xf32, #tpu.memory_space<vmem>>) attributes {dimension_semantics = [#tpu.dimension_semantics<parallel>, #tpu.dimension_semantics<arbitrary>], iteration_bounds = array<i64: 2, 16>, scalar_prefetch = 0 : i64, scratch_operands = 1 : i64, tpu.core_type = #tpu.core_type<tc>, window_params = [{transform_indices = @transform_0, window_bounds = array<i64: 8, 128>}, {transform_indices = @transform_1, window_bounds = array<i64: 1, 8, 128>}, {pipeline_mode = #tpu.pipeline_mode<synchronous>, transform_indices = @transform_2, window_bounds = array<i64: 768, 128>}, {transform_indices = @transform_3, window_bounds = array<i64: 1, 8, 128>}, {transform_indices = @transform_4, window_bounds = array<i64: 1, 2, 128, 128>}]} {
    %c0_i32 = arith.constant 0 : i32
    %0 = arith.cmpi eq, %arg1, %c0_i32 : i32
    %1 = arith.extui %0 : i1 to i32
    %c0_i32_0 = arith.constant 0 : i32
    %2 = arith.cmpi ne, %1, %c0_i32_0 : i32
    scf.if %2 {
      %c0_52 = arith.constant 0 : index
      %c0_53 = arith.constant 0 : index
      %104 = vector.load %arg2[%c0_52, %c0_53] : memref<8x128xf32, #tpu.memory_space<vmem>>, vector<8x128xf32>
      %c0_54 = arith.constant 0 : index
      %c0_55 = arith.constant 0 : index
      %105 = vector.load %arg7[%c0_54, %c0_55] : memref<8x128xf32, #tpu.memory_space<vmem>>, vector<8x128xf32>
      tpu.vector_store %arg7[%c0_54, %c0_55], %104 {strides = array<i32>} : memref<8x128xf32, #tpu.memory_space<vmem>>, vector<8x128xf32>,
      %cst_56 = arith.constant 0.000000e+00 : f32
      %106 = vector.broadcast %cst_56 : f32 to vector<1x2x128x128xf32>
      %c0_57 = arith.constant 0 : index
      %c0_58 = arith.constant 0 : index
      %c0_59 = arith.constant 0 : index
      %c0_60 = arith.constant 0 : index
      %107 = vector.load %arg6[%c0_57, %c0_58, %c0_59, %c0_60] : memref<1x2x128x128xf32, #tpu.memory_space<vmem>>, vector<1x2x128x128xf32>
      tpu.vector_store %arg6[%c0_57, %c0_58, %c0_59, %c0_60], %106 {strides = array<i32>} : memref<1x2x128x128xf32, #tpu.memory_space<vmem>>, vector<1x2x128x128xf32>,
    } else {
    }
    %3 = tpu.iota {dimensions = array<i32: 1>} : vector<8x128xi32>
    %c0 = arith.constant 0 : index
    %c0_1 = arith.constant 0 : index
    %4 = vector.load %arg7[%c0, %c0_1] : memref<8x128xf32, #tpu.memory_space<vmem>>, vector<8x128xf32>
    %c120_i32 = arith.constant 120 : i32
    %5 = vector.broadcast %c120_i32 : i32 to vector<8x128xi32>
    %6 = arith.cmpi sge, %3, %5 : vector<8x128xi32>
    %c128_i32 = arith.constant 128 : i32
    %7 = vector.broadcast %c128_i32 : i32 to vector<8x128xi32>
    %8 = arith.cmpi slt, %3, %7 : vector<8x128xi32>
    %9 = arith.andi %6, %8 : vector<8x128xi1>
    %c0_2 = arith.constant 0 : index
    %c0_3 = arith.constant 0 : index
    %c0_4 = arith.constant 0 : index
    %10 = vector.load %arg3[%c0_2, %c0_3, %c0_4] : memref<1x8x128xf32, #tpu.memory_space<vmem>>, vector<1x8x128xf32>
    %11 = vector.shape_cast %10 : vector<1x8x128xf32> to vector<8x128xf32>
    %12 = arith.select %9, %11, %4 : vector<8x128xi1>, vector<8x128xf32>
    %c112_i32 = arith.constant 112 : i32
    %13 = vector.broadcast %c112_i32 : i32 to vector<8x128xi32>
    %14 = arith.cmpi sge, %3, %13 : vector<8x128xi32>
    %c120_i32_5 = arith.constant 120 : i32
    %15 = vector.broadcast %c120_i32_5 : i32 to vector<8x128xi32>
    %16 = arith.cmpi slt, %3, %15 : vector<8x128xi32>
    %17 = arith.andi %14, %16 : vector<8x128xi1>
    %c0_6 = arith.constant 0 : index
    %c0_7 = arith.constant 0 : index
    %18 = vector.load %arg4[%c0_6, %c0_7] : memref<768x128xf32, #tpu.memory_space<vmem>>, vector<128x128xf32>
    %cst = arith.constant dense<0.000000e+00> : vector<8x128xf32>
    %19 = tpu.matmul %12, %18, %cst {dimension_numbers = #tpu.dot_dimension_numbers<[1], [0], [0], [1], [0, 0, 1, 1], [], []>} : vector<8x128xf32>, vector<128x128xf32>, vector<8x128xf32> -> vector<8x128xf32>
    %cst_8 = arith.constant 5.000000e-01 : f32
    %20 = vector.broadcast %cst_8 : f32 to vector<8x128xf32>
    %21 = arith.cmpf ogt, %19, %20 : vector<8x128xf32>
    %22 = arith.extui %21 : vector<8x128xi1> to vector<8x128xi32>
    %23 = arith.sitofp %22 : vector<8x128xi32> to vector<8x128xf32>
    %24 = arith.select %17, %23, %12 : vector<8x128xi1>, vector<8x128xf32>
    %c128 = arith.constant 128 : index
    %c0_9 = arith.constant 0 : index
    %25 = vector.load %arg4[%c128, %c0_9] : memref<768x128xf32, #tpu.memory_space<vmem>>, vector<128x128xf32>
    %cst_10 = arith.constant dense<0.000000e+00> : vector<8x128xf32>
    %26 = tpu.matmul %24, %25, %cst_10 {dimension_numbers = #tpu.dot_dimension_numbers<[1], [0], [0], [1], [0, 0, 1, 1], [], []>} : vector<8x128xf32>, vector<128x128xf32>, vector<8x128xf32> -> vector<8x128xf32>
    %c0_i32_11 = arith.constant 0 : i32
    %27 = vector.broadcast %c0_i32_11 : i32 to vector<8x128xi32>
    %28 = arith.cmpi sge, %3, %27 : vector<8x128xi32>
    %c96_i32 = arith.constant 96 : i32
    %29 = vector.broadcast %c96_i32 : i32 to vector<8x128xi32>
    %30 = arith.cmpi slt, %3, %29 : vector<8x128xi32>
    %31 = arith.andi %28, %30 : vector<8x128xi1>
    %cst_12 = arith.constant 5.000000e-01 : f32
    %32 = vector.broadcast %cst_12 : f32 to vector<8x128xf32>
    %33 = arith.cmpf ogt, %26, %32 : vector<8x128xf32>
    %34 = arith.extui %33 : vector<8x128xi1> to vector<8x128xi32>
    %35 = arith.sitofp %34 : vector<8x128xi32> to vector<8x128xf32>
    %36 = arith.select %31, %35, %24 : vector<8x128xi1>, vector<8x128xf32>
    %c96_i32_13 = arith.constant 96 : i32
    %37 = vector.broadcast %c96_i32_13 : i32 to vector<8x128xi32>
    %38 = arith.cmpi sge, %3, %37 : vector<8x128xi32>
    %c100_i32 = arith.constant 100 : i32
    %39 = vector.broadcast %c100_i32 : i32 to vector<8x128xi32>
    %40 = arith.cmpi slt, %3, %39 : vector<8x128xi32>
    %41 = arith.andi %38, %40 : vector<8x128xi1>
    %c256 = arith.constant 256 : index
    %c0_14 = arith.constant 0 : index
    %42 = vector.load %arg4[%c256, %c0_14] : memref<768x128xf32, #tpu.memory_space<vmem>>, vector<128x128xf32>
    %cst_15 = arith.constant dense<0.000000e+00> : vector<8x128xf32>
    %43 = tpu.matmul %36, %42, %cst_15 {dimension_numbers = #tpu.dot_dimension_numbers<[1], [0], [0], [1], [0, 0, 1, 1], [], []>} : vector<8x128xf32>, vector<128x128xf32>, vector<8x128xf32> -> vector<8x128xf32>
    %cst_16 = arith.constant 5.000000e-01 : f32
    %44 = vector.broadcast %cst_16 : f32 to vector<8x128xf32>
    %45 = arith.cmpf ogt, %43, %44 : vector<8x128xf32>
    %46 = arith.extui %45 : vector<8x128xi1> to vector<8x128xi32>
    %47 = arith.sitofp %46 : vector<8x128xi32> to vector<8x128xf32>
    %48 = arith.select %41, %47, %36 : vector<8x128xi1>, vector<8x128xf32>
    %c100_i32_17 = arith.constant 100 : i32
    %49 = vector.broadcast %c100_i32_17 : i32 to vector<8x128xi32>
    %50 = arith.cmpi sge, %3, %49 : vector<8x128xi32>
    %c104_i32 = arith.constant 104 : i32
    %51 = vector.broadcast %c104_i32 : i32 to vector<8x128xi32>
    %52 = arith.cmpi slt, %3, %51 : vector<8x128xi32>
    %53 = arith.andi %50, %52 : vector<8x128xi1>
    %c384 = arith.constant 384 : index
    %c0_18 = arith.constant 0 : index
    %54 = vector.load %arg4[%c384, %c0_18] : memref<768x128xf32, #tpu.memory_space<vmem>>, vector<128x128xf32>
    %cst_19 = arith.constant dense<0.000000e+00> : vector<8x128xf32>
    %55 = tpu.matmul %48, %54, %cst_19 {dimension_numbers = #tpu.dot_dimension_numbers<[1], [0], [0], [1], [0, 0, 1, 1], [], []>} : vector<8x128xf32>, vector<128x128xf32>, vector<8x128xf32> -> vector<8x128xf32>
    %cst_20 = arith.constant 5.000000e-01 : f32
    %56 = vector.broadcast %cst_20 : f32 to vector<8x128xf32>
    %57 = arith.cmpf ogt, %55, %56 : vector<8x128xf32>
    %58 = arith.extui %57 : vector<8x128xi1> to vector<8x128xi32>
    %59 = arith.sitofp %58 : vector<8x128xi32> to vector<8x128xf32>
    %60 = arith.select %53, %59, %48 : vector<8x128xi1>, vector<8x128xf32>
    %c104_i32_21 = arith.constant 104 : i32
    %61 = vector.broadcast %c104_i32_21 : i32 to vector<8x128xi32>
    %62 = arith.cmpi sge, %3, %61 : vector<8x128xi32>
    %c108_i32 = arith.constant 108 : i32
    %63 = vector.broadcast %c108_i32 : i32 to vector<8x128xi32>
    %64 = arith.cmpi slt, %3, %63 : vector<8x128xi32>
    %65 = arith.andi %62, %64 : vector<8x128xi1>
    %c512 = arith.constant 512 : index
    %c0_22 = arith.constant 0 : index
    %66 = vector.load %arg4[%c512, %c0_22] : memref<768x128xf32, #tpu.memory_space<vmem>>, vector<128x128xf32>
    %cst_23 = arith.constant dense<0.000000e+00> : vector<8x128xf32>
    %67 = tpu.matmul %60, %66, %cst_23 {dimension_numbers = #tpu.dot_dimension_numbers<[1], [0], [0], [1], [0, 0, 1, 1], [], []>} : vector<8x128xf32>, vector<128x128xf32>, vector<8x128xf32> -> vector<8x128xf32>
    %68 = arith.addf %67, %26 : vector<8x128xf32>
    %cst_24 = arith.constant 5.000000e-01 : f32
    %69 = vector.broadcast %cst_24 : f32 to vector<8x128xf32>
    %70 = arith.cmpf ogt, %68, %69 : vector<8x128xf32>
    %71 = arith.extui %70 : vector<8x128xi1> to vector<8x128xi32>
    %72 = arith.sitofp %71 : vector<8x128xi32> to vector<8x128xf32>
    %73 = arith.select %65, %72, %60 : vector<8x128xi1>, vector<8x128xf32>
    %c108_i32_25 = arith.constant 108 : i32
    %74 = vector.broadcast %c108_i32_25 : i32 to vector<8x128xi32>
    %75 = arith.cmpi sge, %3, %74 : vector<8x128xi32>
    %c112_i32_26 = arith.constant 112 : i32
    %76 = vector.broadcast %c112_i32_26 : i32 to vector<8x128xi32>
    %77 = arith.cmpi slt, %3, %76 : vector<8x128xi32>
    %78 = arith.andi %75, %77 : vector<8x128xi1>
    %c640 = arith.constant 640 : index
    %c0_27 = arith.constant 0 : index
    %79 = vector.load %arg4[%c640, %c0_27] : memref<768x128xf32, #tpu.memory_space<vmem>>, vector<128x128xf32>
    %cst_28 = arith.constant dense<0.000000e+00> : vector<8x128xf32>
    %80 = tpu.matmul %73, %79, %cst_28 {dimension_numbers = #tpu.dot_dimension_numbers<[1], [0], [0], [1], [0, 0, 1, 1], [], []>} : vector<8x128xf32>, vector<128x128xf32>, vector<8x128xf32> -> vector<8x128xf32>
    %cst_29 = arith.constant 5.000000e-01 : f32
    %81 = vector.broadcast %cst_29 : f32 to vector<8x128xf32>
    %82 = arith.cmpf ogt, %80, %81 : vector<8x128xf32>
    %83 = arith.extui %82 : vector<8x128xi1> to vector<8x128xi32>
    %84 = arith.sitofp %83 : vector<8x128xi32> to vector<8x128xf32>
    %85 = arith.select %78, %84, %73 : vector<8x128xi1>, vector<8x128xf32>
    %c0_30 = arith.constant 0 : index
    %c0_31 = arith.constant 0 : index
    %86 = vector.load %arg7[%c0_30, %c0_31] : memref<8x128xf32, #tpu.memory_space<vmem>>, vector<8x128xf32>
    tpu.vector_store %arg7[%c0_30, %c0_31], %85 {strides = array<i32>} : memref<8x128xf32, #tpu.memory_space<vmem>>, vector<8x128xf32>,
    %c0_32 = arith.constant 0 : index
    %c0_33 = arith.constant 0 : index
    %c0_34 = arith.constant 0 : index
    %87 = vector.load %arg5[%c0_32, %c0_33, %c0_34] : memref<1x8x128xf32, #tpu.memory_space<vmem>>, vector<1x8x128xf32>
    %88 = vector.shape_cast %87 : vector<1x8x128xf32> to vector<8x128xf32>
    %89 = vector.shape_cast %85 : vector<8x128xf32> to vector<1x8x128xf32>
    tpu.vector_store %arg5[%c0_32, %c0_33, %c0_34], %89 {strides = array<i32>} : memref<1x8x128xf32, #tpu.memory_space<vmem>>, vector<1x8x128xf32>,
    %c0_35 = arith.constant 0 : index
    %c0_36 = arith.constant 0 : index
    %c0_37 = arith.constant 0 : index
    %c0_38 = arith.constant 0 : index
    %90 = vector.load %arg6[%c0_35, %c0_36, %c0_37, %c0_38] : memref<1x2x128x128xf32, #tpu.memory_space<vmem>>, vector<1x1x128x128xf32>
    %91 = vector.shape_cast %90 : vector<1x1x128x128xf32> to vector<128x128xf32>
    %cst_39 = arith.constant dense<0.000000e+00> : vector<128x128xf32>
    %92 = tpu.matmul %85, %85, %cst_39 {dimension_numbers = #tpu.dot_dimension_numbers<[0], [0], [1], [1], [0, 1, 1, 1], [], []>} : vector<8x128xf32>, vector<8x128xf32>, vector<128x128xf32> -> vector<128x128xf32>
    %93 = arith.addf %91, %92 : vector<128x128xf32>
    %c0_40 = arith.constant 0 : index
    %c0_41 = arith.constant 0 : index
    %c0_42 = arith.constant 0 : index
    %c0_43 = arith.constant 0 : index
    %94 = vector.load %arg6[%c0_40, %c0_41, %c0_42, %c0_43] : memref<1x2x128x128xf32, #tpu.memory_space<vmem>>, vector<1x1x128x128xf32>
    %95 = vector.shape_cast %94 : vector<1x1x128x128xf32> to vector<128x128xf32>
    %96 = vector.shape_cast %93 : vector<128x128xf32> to vector<1x1x128x128xf32>
    tpu.vector_store %arg6[%c0_40, %c0_41, %c0_42, %c0_43], %96 {strides = array<i32>} : memref<1x2x128x128xf32, #tpu.memory_space<vmem>>, vector<1x1x128x128xf32>,
    %c0_44 = arith.constant 0 : index
    %c1 = arith.constant 1 : index
    %c0_45 = arith.constant 0 : index
    %c0_46 = arith.constant 0 : index
    %97 = vector.load %arg6[%c0_44, %c1, %c0_45, %c0_46] : memref<1x2x128x128xf32, #tpu.memory_space<vmem>>, vector<1x1x128x128xf32>
    %98 = vector.shape_cast %97 : vector<1x1x128x128xf32> to vector<128x128xf32>
    %cst_47 = arith.constant dense<0.000000e+00> : vector<128x128xf32>
    %99 = tpu.matmul %4, %85, %cst_47 {dimension_numbers = #tpu.dot_dimension_numbers<[0], [0], [1], [1], [0, 1, 1, 1], [], []>} : vector<8x128xf32>, vector<8x128xf32>, vector<128x128xf32> -> vector<128x128xf32>
    %100 = arith.addf %98, %99 : vector<128x128xf32>
    %c0_48 = arith.constant 0 : index
    %c1_49 = arith.constant 1 : index
    %c0_50 = arith.constant 0 : index
    %c0_51 = arith.constant 0 : index
    %101 = vector.load %arg6[%c0_48, %c1_49, %c0_50, %c0_51] : memref<1x2x128x128xf32, #tpu.memory_space<vmem>>, vector<1x1x128x128xf32>
    %102 = vector.shape_cast %101 : vector<1x1x128x128xf32> to vector<128x128xf32>
    %103 = vector.shape_cast %100 : vector<128x128xf32> to vector<1x1x128x128xf32>
    tpu.vector_store %arg6[%c0_48, %c1_49, %c0_50, %c0_51], %103 {strides = array<i32>} : memref<1x2x128x128xf32, #tpu.memory_space<vmem>>, vector<1x1x128x128xf32>,
    return
  }
  func.func @transform_0(%arg0: i32, %arg1: i32) -> (i32, i32) {
    %c0_i32 = arith.constant 0 : i32
    %c0_i32_0 = arith.constant 0 : i32
    return %arg0, %c0_i32 : i32, i32
  }
  func.func @transform_1(%arg0: i32, %arg1: i32) -> (i32, i32, i32) {
    %c0_i32 = arith.constant 0 : i32
    %c0_i32_0 = arith.constant 0 : i32
    return %arg1, %arg0, %c0_i32 : i32, i32, i32
  }
  func.func @transform_2(%arg0: i32, %arg1: i32) -> (i32, i32) {
    %c0_i32 = arith.constant 0 : i32
    %c0_i32_0 = arith.constant 0 : i32
    %c0_i32_1 = arith.constant 0 : i32
    return %c0_i32, %c0_i32_0 : i32, i32
  }
  func.func @transform_3(%arg0: i32, %arg1: i32) -> (i32, i32, i32) {
    %c0_i32 = arith.constant 0 : i32
    %c0_i32_0 = arith.constant 0 : i32
    return %arg1, %arg0, %c0_i32 : i32, i32, i32
  }
  func.func @transform_4(%arg0: i32, %arg1: i32) -> (i32, i32, i32, i32) {
    %c0_i32 = arith.constant 0 : i32
    %c0_i32_0 = arith.constant 0 : i32
    %c0_i32_1 = arith.constant 0 : i32
    %c0_i32_2 = arith.constant 0 : i32
    return %arg0, %c0_i32, %c0_i32_0, %c0_i32_1 : i32, i32, i32, i32
  }
}

</mosaic_0001>

<bundles_post_ra>
// kernel: bdmsnn_rollout.1
= control target key start
LH: loop header
LB: loop body
LE: loop exit
PB: predicated region body
PF: predicated region fallthrough
CT: control target
= control target key end

     0   :  { %s2285_s15 = smov 0   ;;  %s2287_s16 = smov 0   ;;  %s2859_s0 = inlined_call_operand.vmem [shape: f32[16,128], index: 0, kind: input, shape index: {}]   ;;  %s2860_s1 = inlined_call_operand.vmem [shape: f32[16,16,128], index: 1, kind: input, shape index: {}]   ;;  %s2861_s2 = inlined_call_operand.vmem [shape: f32[768,128], index: 2, kind: input, shape index: {}]   ;;  %s2862_s3 = inlined_call_operand.vmem [shape: f32[16,16,128], index: 3, kind: output, shape index: {0}]   ;;  %s2863_s4 = inlined_call_operand.vmem [shape: f32[2,2,128,128], index: 4, kind: output, shape index: {1}]  }
   0x1   :  { %s2289_s17 = smov 0   ;;  %s2291_s18 = smov 0  }
   0x2   :  { %s2293_s19 = smov 0  }
   0x3 LB: > { %s24_s20 = sadd.s32 1, %s2246_s17  ;;  %s27_s21 = sadd.s32 1, %s2250_s18  ;;  %s2254_s19 = sphi %s2293_s19, %s15_s19   ;;  %s2250_s18 = sphi %s2291_s18, %s2867_s18   ;;  %s2246_s17 = sphi %s2289_s17, %s2866_s17   ;;  %s2242_s16 = sphi %s2287_s16, %s2865_s16   ;;  %s2238_s15 = sphi %s2285_s15, %s2864_s15  }
   0x4   : > { %p25_p0 = scmp.ge.s32.totalorder %s24_s20, 16  ;;  %p1548_p1 = scmp.ge.s32.totalorder %s2254_s19, 1 }
   0x5   : > { %p193_p2 = scmp.lt.s32.totalorder %s2254_s19, 33 }
   0x6   : > { %s2869_s20 = smov (%p25_p0, %s24_s20), 0  ;;  %s2871_s21 = smov (!%p25_p0, %s27_s21), %s2250_s18 }
   0x7   : > { %p194_p3 = pnand %p1548_p1, %p193_p2  ;;  %p29_p4 = scmp.ge.s32.totalorder %s2871_s21, 2 }
   0x8   : > { %p234_p5 = scmp.lt.s32.totalorder (!%p194_p3), %s2242_s16, 1  ;;  %p238_p6 = scmp.lt.s32.totalorder (!%p194_p3), %s2238_s15, 15 }
   0x9   : > { %s2873_s21 = smov (%p29_p4, %s2871_s21), 0  ;;  %197 = sbr.rel (%p194_p3) target bundleno = 1833 (0x729), region = 32 }
   0xa   : > { %p1556_p7 = scmp.ne.s32.totalorder (!%p194_p3), %s2238_s15, 0 }
  0x10   : > { %s2875_s16 = smov (!%p234_p5, %s2242_s16), 1  ;;  %262 = sbr.rel (%p1556_p7) target bundleno = 38 (0x26), region = 36 }
  0x11   : > { %s239_s22 = scalar_select %p238_p6, %s2238_s15, 15 }
  0x12   : > { %s1549_s23 = sshll.u32 %s2875_s16, 3  ;;  %s1629_s24 = sshll.u32 %s2875_s16, 8  ;;  %v2256_v1 = vmov (!%p1556_p7), 0.0  }
  0x13   : > { %s237_s27 = scalar_lea.vmem %s2859_s0, %s1549_s23  ;;  %s1550_s28 = sshll.u32 %s239_s22, 1 }
  0x14   : > { %s243_s29 = sadd.s32 %s1550_s28, %s2875_s16  ;;  %s2325_s6 = scalar_lea.vmem %s2863_s4, %s1629_s24  ;;  %v263_v0 = vld [vmem:[%s237_s27] sm:$0xff] (!%p1556_p7) }
  0x15   : > { %s1551_s7 = sshll.u32 %s243_s29, 3  ;;  %264 = vst [vmem:[#allocation2] sm:$0xff] (!%p1556_p7), %v263_v0  ;;  %265 = vst [vmem:[%s2325_s6] sm:$0xff] (!%p1556_p7), %v2256_v1 }
  0x16   : > { %s2330_s10 = scalar_lea.vmem %s2860_s1, %s1551_s7  ;;  %s2335_s13 = scalar_lea.vmem %s2862_s3, %s1551_s7  ;;  %266 = vst [vmem:[%s2325_s6 + $0x8] sm:$0xff] (!%p1556_p7), %v2256_v1  ;;  %267 = vst [vmem:[%s2325_s6 + $0x10] sm:$0xff] (!%p1556_p7), %v2256_v1 }
  0x17   : > { %268 = vst [vmem:[%s2325_s6 + $0x18] sm:$0xff] %v2256_v1  ;;  %269 = vst [vmem:[%s2325_s6 + $0x20] sm:$0xff] %v2256_v1 }
  0x18   : > { %270 = vst [vmem:[%s2325_s6 + $0x28] sm:$0xff] %v2256_v1  ;;  %271 = vst [vmem:[%s2325_s6 + $0x30] sm:$0xff] %v2256_v1 }
  0x19   : > { %272 = vst [vmem:[%s2325_s6 + $0x38] sm:$0xff] %v2256_v1  ;;  %273 = vst [vmem:[%s2325_s6 + $0x40] sm:$0xff] %v2256_v1 }
  0x1a   : > { %274 = vst [vmem:[%s2325_s6 + $0x48] sm:$0xff] %v2256_v1  ;;  %275 = vst [vmem:[%s2325_s6 + $0x50] sm:$0xff] %v2256_v1 }
  0x1b   : > { %276 = vst [vmem:[%s2325_s6 + $0x58] sm:$0xff] %v2256_v1  ;;  %277 = vst [vmem:[%s2325_s6 + $0x60] sm:$0xff] %v2256_v1 }
  0x1c   : > { %278 = vst [vmem:[%s2325_s6 + $0x68] sm:$0xff] %v2256_v1  ;;  %279 = vst [vmem:[%s2325_s6 + $0x70] sm:$0xff] %v2256_v1 }
  0x1d   : > { %280 = vst [vmem:[%s2325_s6 + $0x78] sm:$0xff] %v2256_v1  ;;  %281 = vst [vmem:[%s2325_s6 + $0x80] sm:$0xff] %v2256_v1 }
  0x1e   : > { %282 = vst [vmem:[%s2325_s6 + $0x88] sm:$0xff] %v2256_v1  ;;  %283 = vst [vmem:[%s2325_s6 + $0x90] sm:$0xff] %v2256_v1 }
  0x1f   : > { %284 = vst [vmem:[%s2325_s6 + $0x98] sm:$0xff] %v2256_v1  ;;  %285 = vst [vmem:[%s2325_s6 + $0xa0] sm:$0xff] %v2256_v1 }
  0x20   : > { %286 = vst [vmem:[%s2325_s6 + $0xa8] sm:$0xff] %v2256_v1  ;;  %287 = vst [vmem:[%s2325_s6 + $0xb0] sm:$0xff] %v2256_v1 }
  0x21   : > { %288 = vst [vmem:[%s2325_s6 + $0xb8] sm:$0xff] %v2256_v1  ;;  %289 = vst [vmem:[%s2325_s6 + $0xc0] sm:$0xff] %v2256_v1 }
  0x22   : > { %290 = vst [vmem:[%s2325_s6 + $0xc8] sm:$0xff] %v2256_v1  ;;  %291 = vst [vmem:[%s2325_s6 + $0xd0] sm:$0xff] %v2256_v1 }
  0x23   : > { %292 = vst [vmem:[%s2325_s6 + $0xd8] sm:$0xff] %v2256_v1  ;;  %293 = vst [vmem:[%s2325_s6 + $0xe0] sm:$0xff] %v2256_v1 }
  0x24   : > { %294 = vst [vmem:[%s2325_s6 + $0xe8] sm:$0xff] %v2256_v1  ;;  %295 = vst [vmem:[%s2325_s6 + $0xf0] sm:$0xff] %v2256_v1 }
  0x25   : > { %296 = vst [vmem:[%s2325_s6 + $0xf8] sm:$0xff] %v2256_v1 }
  0x26 PF: > { %v308_v2 = vld [vmem:[%s2861_s2] sm:$0xff]  ;;  %v309_v3 = vld [vmem:[%s2861_s2 + $0x8] sm:$0xff]  ;;  %v310_v4 = vld [vmem:[%s2861_s2 + $0x10] sm:$0xff]  ;;  %v2257_v5 = vmov 0.0|0.0   ;;  %vm2258_vm0 = vmmov 0   ;;  %v2259_v8 = vmov 0.0   ;;  %v297_v38 = vlaneseq }
  0x27   : > { %2028 = vmatprep.subr.bf16.mxu0 %v2257_v5  ;;  %v2029_v6 = vpack.c.bf16 %v309_v3, %v308_v2  ;;  %v311_v7 = vld [vmem:[%s2861_s2 + $0x18] sm:$0xff]  ;;  %1798 = vmatprep.mubr.msk.f32.mxu0 %vm2258_vm0, %v2259_v8  ;;  %v312_v10 = vld [vmem:[%s2861_s2 + $0x20] sm:$0xff]  ;;  %v313_v11 = vld [vmem:[%s2861_s2 + $0x28] sm:$0xff] }
  0x28   : > { %2052 = vmatprep.subr.bf16.mxu1 %v2257_v5  ;;  %1833 = vmatprep.mubr.msk.f32.mxu1 %vm2258_vm0, %v2259_v8  ;;  %v2032_v9 = vpack.c.bf16 %v311_v7, %v310_v4  ;;  %v398_v12 = vld [vmem:[%s2861_s2 + $0x80] sm:$0xff]  ;;  %v399_v13 = vld [vmem:[%s2861_s2 + $0x88] sm:$0xff]  ;;  %v400_v14 = vld [vmem:[%s2861_s2 + $0x90] sm:$0xff]  ;;  %v2035_v15 = vpack.c.bf16 %v313_v11, %v312_v10  ;;  %v2470_v45 = vand.u32 127, %v297_v38 }
  0x29   : > { %2030 = vmatpush3.bf16.msra.mxu0 %v2029_v6  ;;  %v2053_v16 = vpack.c.bf16 %v399_v13, %v398_v12  ;;  %v401_v17 = vld [vmem:[%s2861_s2 + $0x98] sm:$0xff]  ;;  %v314_v18 = vld [vmem:[%s2861_s2 + $0x30] sm:$0xff]  ;;  %v402_v21 = vld [vmem:[%s2861_s2 + $0xa0] sm:$0xff] }
  0x2a   : > { %2031 = vmatprep.subr.bf16.mxu0 %v2257_v5  ;;  %v315_v19 = vld [vmem:[%s2861_s2 + $0x38] sm:$0xff]  ;;  %v2056_v20 = vpack.c.bf16 %v401_v17, %v400_v14  ;;  %v403_v22 = vld [vmem:[%s2861_s2 + $0xa8] sm:$0xff]  ;;  %v316_v24 = vld [vmem:[%s2861_s2 + $0x40] sm:$0xff]  ;;  %vm300_vm1 = vcmp.ge.s32.totalorder %v2470_v45, 120  ;;  %vm305_vm2 = vcmp.ge.s32.totalorder %v2470_v45, 112  ;;  %vm306_vm3 = vcmp.lt.s32.totalorder %v2470_v45, 120 }
  0x2b   : > { %2054 = vmatpush3.bf16.msra.mxu1 %v2053_v16  ;;  %v2038_v23 = vpack.c.bf16 %v315_v19, %v314_v18  ;;  %v317_v25 = vld [vmem:[%s2861_s2 + $0x48] sm:$0xff]  ;;  %v2059_v26 = vpack.c.bf16 %v403_v22, %v402_v21  ;;  %v404_v27 = vld [vmem:[%s2861_s2 + $0xb0] sm:$0xff]  ;;  %v405_v28 = vld [vmem:[%s2861_s2 + $0xb8] sm:$0xff]  ;;  %vm485_vm6 = vcmp.lt.s32.totalorder %v2470_v45, 96  ;;  %vm491_vm8 = vcmp.ge.s32.totalorder %v2470_v45, 96 }
  0x2c   : > { %2055 = vmatprep.subr.bf16.mxu1 %v2257_v5  ;;  %v2041_v29 = vpack.c.bf16 %v317_v25, %v316_v24  ;;  %v318_v30 = vld [vmem:[%s2861_s2 + $0x50] sm:$0xff]  ;;  %v319_v31 = vld [vmem:[%s2861_s2 + $0x58] sm:$0xff]  ;;  %v2062_v32 = vpack.c.bf16 %v405_v28, %v404_v27  ;;  %v406_v33 = vld [vmem:[%s2861_s2 + $0xc0] sm:$0xff]  ;;  %vm492_vm9 = vcmp.lt.s32.totalorder %v2470_v45, 100  ;;  %vm584_vm12 = vcmp.ge.s32.totalorder %v2470_v45, 100 }
  0x2d   : > { %2033 = vmatpush3.bf16.msra.mxu0 %v2032_v9  ;;  %v407_v34 = vld [vmem:[%s2861_s2 + $0xc8] sm:$0xff]  ;;  %v2044_v35 = vpack.c.bf16 %v319_v31, %v318_v30  ;;  %v320_v36 = vld [vmem:[%s2861_s2 + $0x60] sm:$0xff]  ;;  %v408_v40 = vld [vmem:[%s2861_s2 + $0xd0] sm:$0xff]  ;;  %vm585_vm13 = vcmp.lt.s32.totalorder %v2470_v45, 104 }
  0x2e   : > { %2034 = vmatprep.subr.bf16.mxu0 %v2257_v5  ;;  %v321_v37 = vld [vmem:[%s2861_s2 + $0x68] sm:$0xff]  ;;  %v2065_v39 = vpack.c.bf16 %v407_v34, %v406_v33  ;;  %v409_v41 = vld [vmem:[%s2861_s2 + $0xd8] sm:$0xff]  ;;  %v322_v43 = vld [vmem:[%s2861_s2 + $0x70] sm:$0xff] }
  0x2f   : > { %2057 = vmatpush3.bf16.msra.mxu1 %v2056_v20  ;;  %v2047_v42 = vpack.c.bf16 %v321_v37, %v320_v36  ;;  %v323_v44 = vld [vmem:[%s2861_s2 + $0x78] sm:$0xff]  ;;  %v2068_v46 = vpack.c.bf16 %v409_v41, %v408_v40  ;;  %v410_v47 = vld [vmem:[%s2861_s2 + $0xe0] sm:$0xff]  ;;  %v411_v48 = vld [vmem:[%s2861_s2 + $0xe8] sm:$0xff] }
  0x30   : > { %2058 = vmatprep.subr.bf16.mxu1 %v2257_v5  ;;  %v2050_v49 = vpack.c.bf16 %v323_v44, %v322_v43  ;;  %v2480_v50 = vld [vmem:[#allocation2] sm:$0xff]  ;;  %v2071_v52 = vpack.c.bf16 %v411_v48, %v410_v47  ;;  %v412_v54 = vld [vmem:[%s2861_s2 + $0xf0] sm:$0xff]  ;;  %v413_v55 = vld [vmem:[%s2861_s2 + $0xf8] sm:$0xff] }
  0x31   : > { %2036 = vmatpush3.bf16.msra.mxu0 %v2035_v15  ;;  %v303_v51 = vld [vmem:[%s2330_s10] sm:$0xff]  ;;  %v2074_v56 = vpack.c.bf16 %v413_v55, %v412_v54  ;;  %v495_v58 = vld [vmem:[%s2861_s2 + $0x108] sm:$0xff]  ;;  %v496_v59 = vld [vmem:[%s2861_s2 + $0x110] sm:$0xff] }
  0x32   : > { %2037 = vmatprep.subr.bf16.mxu0 %v2257_v5  ;;  %v304_v53 = vsel %vm300_vm1, %v303_v51, %v2480_v50  ;;  %v494_v57 = vld [vmem:[%s2861_s2 + $0x100] sm:$0xff]  ;;  %v497_v61 = vld [vmem:[%s2861_s2 + $0x118] sm:$0xff]  ;;  %v499_v0 = vld [vmem:[%s2861_s2 + $0x128] sm:$0xff]  ;;  %vm678_vm1 = vcmp.lt.s32.totalorder %v2470_v45, 108 }
  0x33   : > { %2060 = vmatpush3.bf16.msra.mxu1 %v2059_v26  ;;  %v2077_v60 = vpack.c.bf16 %v495_v58, %v494_v57  ;;  %v2080_v62 = vpack.c.bf16 %v497_v61, %v496_v59  ;;  %v498_v63 = vld [vmem:[%s2861_s2 + $0x120] sm:$0xff]  ;;  %v500_v2 = vld [vmem:[%s2861_s2 + $0x130] sm:$0xff]  ;;  %v501_v3 = vld [vmem:[%s2861_s2 + $0x138] sm:$0xff] }
  0x34   : > { %2061 = vmatprep.subr.bf16.mxu1 %v2257_v5  ;;  %v2083_v1 = vpack.c.bf16 %v499_v0, %v498_v63  ;;  %v2086_v4 = vpack.c.bf16 %v501_v3, %v500_v2  ;;  %v502_v6 = vld [vmem:[%s2861_s2 + $0x140] sm:$0xff]  ;;  %v503_v7 = vld [vmem:[%s2861_s2 + $0x148] sm:$0xff]  ;;  %v504_v10 = vld [vmem:[%s2861_s2 + $0x150] sm:$0xff] }
  0x35   : > { %2039 = vmatpush3.bf16.msra.mxu0 %v2038_v23  ;;  %v2089_v9 = vpack.c.bf16 %v503_v7, %v502_v6  ;;  %v505_v11 = vld [vmem:[%s2861_s2 + $0x158] sm:$0xff]  ;;  %v506_v13 = vld [vmem:[%s2861_s2 + $0x160] sm:$0xff]  ;;  %v507_v14 = vld [vmem:[%s2861_s2 + $0x168] sm:$0xff] }
  0x36   : > { %2040 = vmatprep.subr.bf16.mxu0 %v2257_v5  ;;  %v2092_v12 = vpack.c.bf16 %v505_v11, %v504_v10  ;;  %v2095_v15 = vpack.c.bf16 %v507_v14, %v506_v13  ;;  %vm307_vm4 = vmand %vm305_vm2, %vm306_vm3  ;;  %v508_v20 = vld [vmem:[%s2861_s2 + $0x170] sm:$0xff]  ;;  %v509_v21 = vld [vmem:[%s2861_s2 + $0x178] sm:$0xff] }
  0x37   : > { %2063 = vmatpush3.bf16.msra.mxu1 %v2062_v32  ;;  %v2098_v22 = vpack.c.bf16 %v509_v21, %v508_v20  ;;  %v587_v23 = vld [vmem:[%s2861_s2 + $0x180] sm:$0xff]  ;;  %v588_v24 = vld [vmem:[%s2861_s2 + $0x188] sm:$0xff]  ;;  %v589_v25 = vld [vmem:[%s2861_s2 + $0x190] sm:$0xff] }
  0x38   : > { %2064 = vmatprep.subr.bf16.mxu1 %v2257_v5  ;;  %v2101_v26 = vpack.c.bf16 %v588_v24, %v587_v23  ;;  %v590_v27 = vld [vmem:[%s2861_s2 + $0x198] sm:$0xff]  ;;  %v592_v30 = vld [vmem:[%s2861_s2 + $0x1a8] sm:$0xff]  ;;  %v593_v32 = vld [vmem:[%s2861_s2 + $0x1b0] sm:$0xff] }
  0x39   : > { %2042 = vmatpush3.bf16.msra.mxu0 %v2041_v29  ;;  %v2104_v28 = vpack.c.bf16 %v590_v27, %v589_v25  ;;  %v591_v29 = vld [vmem:[%s2861_s2 + $0x1a0] sm:$0xff]  ;;  %v594_v33 = vld [vmem:[%s2861_s2 + $0x1b8] sm:$0xff]  ;;  %v596_v36 = vld [vmem:[%s2861_s2 + $0x1c8] sm:$0xff] }
  0x3a   : > { %2043 = vmatprep.subr.bf16.mxu0 %v2257_v5  ;;  %v2107_v31 = vpack.c.bf16 %v592_v30, %v591_v29  ;;  %v2110_v34 = vpack.c.bf16 %v594_v33, %v593_v32  ;;  %v597_v38 = vld [vmem:[%s2861_s2 + $0x1d0] sm:$0xff]  ;;  %v599_v41 = vld [vmem:[%s2861_s2 + $0x1e0] sm:$0xff]  ;;  %v602_v51 = vld [vmem:[%s2861_s2 + $0x1f8] sm:$0xff] }
  0x3b   : > { %2066 = vmatpush3.bf16.msra.mxu1 %v2065_v39  ;;  %v598_v39 = vld [vmem:[%s2861_s2 + $0x1d8] sm:$0xff]  ;;  %v681_v54 = vld [vmem:[%s2861_s2 + $0x208] sm:$0xff]  ;;  %v682_v55 = vld [vmem:[%s2861_s2 + $0x210] sm:$0xff] }
  0x3c   : > { %2067 = vmatprep.subr.bf16.mxu1 %v2257_v5  ;;  %v2116_v40 = vpack.c.bf16 %v598_v39, %v597_v38  ;;  %v683_v57 = vld [vmem:[%s2861_s2 + $0x218] sm:$0xff]  ;;  %v684_v59 = vld [vmem:[%s2861_s2 + $0x220] sm:$0xff]  ;;  %v689_v2 = vld [vmem:[%s2861_s2 + $0x248] sm:$0xff] }
  0x3d   : > { %2045 = vmatpush3.bf16.msra.mxu0 %v2044_v35  ;;  %v595_v35 = vld [vmem:[%s2861_s2 + $0x1c0] sm:$0xff]  ;;  %v2128_v58 = vpack.c.bf16 %v683_v57, %v682_v55  ;;  %v687_v63 = vld [vmem:[%s2861_s2 + $0x238] sm:$0xff]  ;;  %v693_v10 = vld [vmem:[%s2861_s2 + $0x268] sm:$0xff] }
  0x3e   : > { %2046 = vmatprep.subr.bf16.mxu0 %v2257_v5  ;;  %v2113_v37 = vpack.c.bf16 %v596_v36, %v595_v35  ;;  %v691_v6 = vld [vmem:[%s2861_s2 + $0x258] sm:$0xff]  ;;  %vm493_vm10 = vmand %vm491_vm8, %vm492_vm9  ;;  %v774_v20 = vld [vmem:[%s2861_s2 + $0x288] sm:$0xff]  ;;  %vm913_vm8 = vcmask 64512  }
  0x3f   : > { %2069 = vmatpush3.bf16.msra.mxu1 %v2068_v46  ;;  %v775_v21 = vld [vmem:[%s2861_s2 + $0x290] sm:$0xff]  ;;  %v776_v23 = vld [vmem:[%s2861_s2 + $0x298] sm:$0xff]  ;;  %v777_v25 = vld [vmem:[%s2861_s2 + $0x2a0] sm:$0xff] }
  0x40   : > { %2070 = vmatprep.subr.bf16.mxu1 %v2257_v5  ;;  %v2152_v24 = vpack.c.bf16 %v776_v23, %v775_v21  ;;  %v780_v29 = vld [vmem:[%s2861_s2 + $0x2b8] sm:$0xff]  ;;  %v782_v32 = vld [vmem:[%s2861_s2 + $0x2c8] sm:$0xff]  ;;  %vm586_vm14 = vmand %vm584_vm12, %vm585_vm13 }
  0x41   : > { %2048 = vmatpush3.bf16.msra.mxu0 %v2047_v42  ;;  %v600_v42 = vld [vmem:[%s2861_s2 + $0x1e8] sm:$0xff]  ;;  %v784_v35 = vld [vmem:[%s2861_s2 + $0x2d8] sm:$0xff] }
  0x42   : > { %2049 = vmatprep.subr.bf16.mxu0 %v2257_v5  ;;  %v2119_v43 = vpack.c.bf16 %v600_v42, %v599_v41  ;;  %v786_v38 = vld [vmem:[%s2861_s2 + $0x2e8] sm:$0xff] }
  0x43   : > { %2072 = vmatpush3.bf16.msra.mxu1 %v2071_v52 }
  0x44   : > { %2073 = vmatprep.subr.bf16.mxu1 %v2257_v5 }
  0x45   : > { %2051 = vmatpush3.bf16.msra.mxu0 %v2050_v49  ;;  %v601_v49 = vld [vmem:[%s2861_s2 + $0x1f0] sm:$0xff] }
  0x46   : > { %2076 = vmatprep.subr.bf16.mxu0 %v2257_v5  ;;  %v2122_v52 = vpack.c.bf16 %v602_v51, %v601_v49 }
  0x47   : > { %2075 = vmatpush3.bf16.msra.mxu1 %v2074_v56 }
  0x48   : > { %1799 = vmatmul.mubr.f32.vlgmr.msra.gmra.mrb[0].mxu0 %v304_v53  ;;  %2100 = vmatprep.subr.bf16.mxu1 %v2257_v5 }
  0x49   : > { %1868 = vmatprep.mubr.msk.f32.mxu0 %vm2258_vm0, %v2259_v8  ;;  %2078 = vmatpush3.bf16.msra.mxu0 %v2077_v60  ;;  %v685_v60 = vld [vmem:[%s2861_s2 + $0x228] sm:$0xff] }
  0x4a   : > { %2079 = vmatprep.subr.bf16.mxu0 %v2257_v5  ;;  %v2131_v61 = vpack.c.bf16 %v685_v60, %v684_v59 }
  0x4d   : > { %2081 = vmatpush3.bf16.msra.mxu0 %v2080_v62  ;;  %v686_v62 = vld [vmem:[%s2861_s2 + $0x230] sm:$0xff] }
  0x4e   : > { %2082 = vmatprep.subr.bf16.mxu0 %v2257_v5  ;;  %v2134_v0 = vpack.c.bf16 %v687_v63, %v686_v62 }
  0x51   : > { %2084 = vmatpush3.bf16.msra.mxu0 %v2083_v1  ;;  %v688_v1 = vld [vmem:[%s2861_s2 + $0x240] sm:$0xff] }
  0x52   : > { %2085 = vmatprep.subr.bf16.mxu0 %v2257_v5  ;;  %v2137_v3 = vpack.c.bf16 %v689_v2, %v688_v1 }
  0x55   : > { %2087 = vmatpush3.bf16.msra.mxu0 %v2086_v4  ;;  %v690_v4 = vld [vmem:[%s2861_s2 + $0x250] sm:$0xff] }
  0x56   : > { %2088 = vmatprep.subr.bf16.mxu0 %v2257_v5  ;;  %v2140_v7 = vpack.c.bf16 %v691_v6, %v690_v4 }
  0x59   : > { %2090 = vmatpush3.bf16.msra.mxu0 %v2089_v9  ;;  %v692_v9 = vld [vmem:[%s2861_s2 + $0x260] sm:$0xff] }
  0x5a   : > { %2091 = vmatprep.subr.bf16.mxu0 %v2257_v5  ;;  %v2143_v11 = vpack.c.bf16 %v693_v10, %v692_v9 }
  0x5d   : > { %2093 = vmatpush3.bf16.msra.mxu0 %v2092_v12 }
  0x5e   : > { %2094 = vmatprep.subr.bf16.mxu0 %v2257_v5 }
  0x61   : > { %2096 = vmatpush3.bf16.msra.mxu0 %v2095_v15 }
  0x62   : > { %2097 = vmatprep.subr.bf16.mxu0 %v2257_v5 }
  0x65   : > { %2099 = vmatpush3.bf16.msra.mxu0 %v2098_v22 }
  0x66   : > { %2124 = vmatprep.subr.bf16.mxu0 %v2257_v5 }
 0x11b   : > { %v390_v16 = vpop.f32.mrb[0].mxu0 }
 0x11c   : > { %vm394_vm5 = vcmp.gt.f32.partialorder %v390_v16, 0.5  ;;  %v1800_v17 = vpop.f32.mrb[1].mxu0  ;;  %v694_v16 = vld [vmem:[%s2861_s2 + $0x270] sm:$0xff] }
 0x11d   : > { %v1557_v18 = vsel %vm394_vm5, 1.0, %v2259_v8  ;;  %v695_v17 = vld [vmem:[%s2861_s2 + $0x278] sm:$0xff]  ;;  %vm771_vm5 = vcmp.lt.s32.totalorder %v2470_v45, 112 }
 0x11e   : > { %v397_v19 = vsel %vm307_vm4, %v1557_v18, %v304_v53  ;;  %v680_v53 = vld [vmem:[%s2861_s2 + $0x200] sm:$0xff]  ;;  %v2146_v18 = vpack.c.bf16 %v695_v17, %v694_v16  ;;  %vm770_vm4 = vcmp.ge.s32.totalorder %v2470_v45, 108 }
 0x11f   : > { %1834 = vmatmul.mubr.f32.vlgmr.msra.gmra.mrb[0].mxu1 %v397_v19  ;;  %v2125_v56 = vpack.c.bf16 %v681_v54, %v680_v53 }
 0x120   : > { %1903 = vmatprep.mubr.msk.f32.mxu1 %vm2258_vm0, %v2259_v8  ;;  %2102 = vmatpush3.bf16.msra.mxu1 %v2101_v26  ;;  %v778_v26 = vld [vmem:[%s2861_s2 + $0x2a8] sm:$0xff] }
 0x121   : > { %2103 = vmatprep.subr.bf16.mxu1 %v2257_v5  ;;  %v2155_v27 = vpack.c.bf16 %v778_v26, %v777_v25  ;;  %v865_v25 = vld [vmem:[%s2325_s6] sm:$0xff] }
 0x124   : > { %2105 = vmatpush3.bf16.msra.mxu1 %v2104_v28  ;;  %v779_v28 = vld [vmem:[%s2861_s2 + $0x2b0] sm:$0xff] }
 0x125   : > { %2106 = vmatprep.subr.bf16.mxu1 %v2257_v5  ;;  %v2158_v30 = vpack.c.bf16 %v780_v29, %v779_v28 }
 0x128   : > { %2108 = vmatpush3.bf16.msra.mxu1 %v2107_v31  ;;  %v781_v31 = vld [vmem:[%s2861_s2 + $0x2c0] sm:$0xff] }
 0x129   : > { %2109 = vmatprep.subr.bf16.mxu1 %v2257_v5  ;;  %v2161_v33 = vpack.c.bf16 %v782_v32, %v781_v31  ;;  %v867_v31 = vld [vmem:[%s2325_s6 + $0x10] sm:$0xff] }
 0x12c   : > { %2111 = vmatpush3.bf16.msra.mxu1 %v2110_v34  ;;  %v783_v34 = vld [vmem:[%s2861_s2 + $0x2d0] sm:$0xff] }
 0x12d   : > { %2112 = vmatprep.subr.bf16.mxu1 %v2257_v5  ;;  %v2164_v36 = vpack.c.bf16 %v784_v35, %v783_v34 }
 0x130   : > { %2114 = vmatpush3.bf16.msra.mxu1 %v2113_v37  ;;  %v785_v37 = vld [vmem:[%s2861_s2 + $0x2e0] sm:$0xff] }
 0x131   : > { %2115 = vmatprep.subr.bf16.mxu1 %v2257_v5  ;;  %v2167_v39 = vpack.c.bf16 %v786_v38, %v785_v37  ;;  %v869_v37 = vld [vmem:[%s2325_s6 + $0x20] sm:$0xff] }
 0x134   : > { %2117 = vmatpush3.bf16.msra.mxu1 %v2116_v40 }
 0x135   : > { %2118 = vmatprep.subr.bf16.mxu1 %v2257_v5 }
 0x138   : > { %2120 = vmatpush3.bf16.msra.mxu1 %v2119_v43 }
 0x139   : > { %2121 = vmatprep.subr.bf16.mxu1 %v2257_v5 }
 0x13c   : > { %2123 = vmatpush3.bf16.msra.mxu1 %v2122_v52 }
 0x13d   : > { %2148 = vmatprep.subr.bf16.mxu1 %v2257_v5 }
 0x1f2   : > { %v2607_v44 = vpop.f32.mrb[0].mxu1 }
 0x1f3   : > { %vm487_vm7 = vcmp.gt.f32.partialorder %v2607_v44, 0.5  ;;  %v1835_v46 = vpop.f32.mrb[1].mxu1 }
 0x1f4   : > { %v1558_v47 = vsel %vm487_vm7, 1.0, %v2259_v8  ;;  %v787_v46 = vld [vmem:[%s2861_s2 + $0x2f0] sm:$0xff] }
 0x1f5   : > { %v490_v48 = vsel %vm485_vm6, %v1558_v47, %v397_v19  ;;  %v773_v19 = vld [vmem:[%s2861_s2 + $0x280] sm:$0xff]  ;;  %vm772_vm6 = vmand %vm770_vm4, %vm771_vm5 }
 0x1f6   : > { %1869 = vmatmul.mubr.f32.vlgmr.msra.gmra.mrb[2].mxu0 %v490_v48  ;;  %v2149_v22 = vpack.c.bf16 %v774_v20, %v773_v19 }
 0x1f7   : > { %1938 = vmatprep.mubr.msk.f32.mxu0 %vm2258_vm0, %v2259_v8  ;;  %2126 = vmatpush3.bf16.msra.mxu0 %v2125_v56 }
 0x1f8   : > { %2127 = vmatprep.subr.bf16.mxu0 %v2257_v5 }
 0x1fb   : > { %2129 = vmatpush3.bf16.msra.mxu0 %v2128_v58 }
 0x1fc   : > { %2130 = vmatprep.subr.bf16.mxu0 %v2257_v5 }
 0x1ff   : > { %2132 = vmatpush3.bf16.msra.mxu0 %v2131_v61 }
 0x200   : > { %2133 = vmatprep.subr.bf16.mxu0 %v2257_v5 }
 0x203   : > { %2135 = vmatpush3.bf16.msra.mxu0 %v2134_v0 }
 0x204   : > { %2136 = vmatprep.subr.bf16.mxu0 %v2257_v5 }
 0x207   : > { %2138 = vmatpush3.bf16.msra.mxu0 %v2137_v3 }
 0x208   : > { %2139 = vmatprep.subr.bf16.mxu0 %v2257_v5 }
 0x20b   : > { %2141 = vmatpush3.bf16.msra.mxu0 %v2140_v7 }
 0x20c   : > { %2142 = vmatprep.subr.bf16.mxu0 %v2257_v5 }
 0x20f   : > { %2144 = vmatpush3.bf16.msra.mxu0 %v2143_v11 }
 0x210   : > { %2145 = vmatprep.subr.bf16.mxu0 %v2257_v5 }
 0x213   : > { %2147 = vmatpush3.bf16.msra.mxu0 %v2146_v18 }
 0x2c9   : > { %v576_v12 = vpop.f32.mrb[2].mxu0 }
 0x2ca   : > { %vm580_vm11 = vcmp.gt.f32.partialorder %v576_v12, 0.5  ;;  %v1870_v13 = vpop.f32.mrb[3].mxu0 }
 0x2cb   : > { %v1559_v14 = vsel %vm580_vm11, 1.0, %v2259_v8 }
 0x2cc   : > { %v583_v15 = vsel %vm493_vm10, %v1559_v14, %v490_v48 }
 0x2cd   : > { %1904 = vmatmul.mubr.f32.vlgmr.msra.gmra.mrb[2].mxu1 %v583_v15 }
 0x2ce   : > { %1973 = vmatprep.mubr.msk.f32.mxu1 %vm2258_vm0, %v2259_v8  ;;  %2150 = vmatpush3.bf16.msra.mxu1 %v2149_v22  ;;  %vm677_vm0 = vcmp.ge.s32.totalorder %v2470_v45, 104 }
 0x2cf   : > { %2151 = vmatprep.subr.bf16.mxu1 %v2257_v5  ;;  %vm679_vm2 = vmand %vm677_vm0, %vm678_vm1 }
 0x2d2   : > { %2153 = vmatpush3.bf16.msra.mxu1 %v2152_v24  ;;  %v866_v24 = vld [vmem:[%s2325_s6 + $0x8] sm:$0xff] }
 0x2d3   : > { %2154 = vmatprep.subr.bf16.mxu1 %v2257_v5 }
 0x2d6   : > { %2156 = vmatpush3.bf16.msra.mxu1 %v2155_v27 }
 0x2d7   : > { %2157 = vmatprep.subr.bf16.mxu1 %v2257_v5 }
 0x2da   : > { %2159 = vmatpush3.bf16.msra.mxu1 %v2158_v30  ;;  %v868_v30 = vld [vmem:[%s2325_s6 + $0x18] sm:$0xff] }
 0x2db   : > { %2160 = vmatprep.subr.bf16.mxu1 %v2257_v5 }
 0x2de   : > { %2162 = vmatpush3.bf16.msra.mxu1 %v2161_v33 }
 0x2df   : > { %2163 = vmatprep.subr.bf16.mxu1 %v2257_v5 }
 0x2e2   : > { %2165 = vmatpush3.bf16.msra.mxu1 %v2164_v36  ;;  %v870_v36 = vld [vmem:[%s2325_s6 + $0x28] sm:$0xff] }
 0x2e3   : > { %2166 = vmatprep.subr.bf16.mxu1 %v2257_v5 }
 0x2e6   : > { %2168 = vmatpush3.bf16.msra.mxu1 %v2167_v39 }
 0x2e7   : > { %2169 = vmatprep.subr.bf16.mxu1 %v2257_v5  ;;  %v788_v5 = vld [vmem:[%s2861_s2 + $0x2f8] sm:$0xff] }
 0x2e8   : > { %v2170_v47 = vpack.c.bf16 %v788_v5, %v787_v46 }
 0x2ea   : > { %2171 = vmatpush3.bf16.msra.mxu1 %v2170_v47 }
 0x3a0   : > { %v669_v40 = vpop.f32.mrb[2].mxu1 }
 0x3a1   : > { %vm673_vm15 = vcmp.gt.f32.partialorder %v669_v40, 0.5  ;;  %v1905_v41 = vpop.f32.mrb[3].mxu1 }
 0x3a2   : > { %v1560_v42 = vsel %vm673_vm15, 1.0, %v2259_v8 }
 0x3a3   : > { %v676_v43 = vsel %vm586_vm14, %v1560_v42, %v583_v15  ;;  %v872_v42 = vld [vmem:[%s2325_s6 + $0x38] sm:$0xff] }
 0x3a4   : > { %1939 = vmatmul.mubr.f32.vlgmr.msra.gmra.mrb[4].mxu0 %v676_v43 }
 0x477   : > { %v762_v48 = vpop.f32.mrb[4].mxu0 }
 0x478   : > { %v763_v49 = vadd.f32 %v762_v48, %v2607_v44  ;;  %v1940_v51 = vpop.f32.mrb[5].mxu0 }
 0x479   : > { %v873_v51 = vld [vmem:[%s2325_s6 + $0x40] sm:$0xff] }
 0x47a   : > { %vm766_vm3 = vcmp.gt.f32.partialorder %v763_v49, 0.5  ;;  %v874_v49 = vld [vmem:[%s2325_s6 + $0x48] sm:$0xff] }
 0x47b   : > { %v1561_v52 = vsel %vm766_vm3, 1.0, %v2259_v8 }
 0x47c   : > { %v769_v53 = vsel %vm679_vm2, %v1561_v52, %v676_v43  ;;  %v871_v43 = vld [vmem:[%s2325_s6 + $0x30] sm:$0xff] }
 0x47d   : > { %1974 = vmatmul.mubr.f32.vlgmr.msra.gmra.mrb[4].mxu1 %v769_v53 }
 0x550   : > { %v855_v54 = vpop.f32.mrb[4].mxu1 }
 0x551   : > { %vm859_vm7 = vcmp.gt.f32.partialorder %v855_v54, 0.5  ;;  %v1975_v55 = vpop.f32.mrb[5].mxu1 }
 0x552   : > { %v1562_v56 = vsel %vm859_vm7, 1.0, %v2259_v8 }
 0x553   : > { %v862_v57 = vsel %vm772_vm6, %v1562_v56, %v769_v53  ;;  %v876_v56 = vld [vmem:[%s2325_s6 + $0x58] sm:$0xff] }
 0x554   : > { %863 = vst [vmem:[#allocation2] sm:$0xff] %v862_v57  ;;  %864 = vst [vmem:[%s2335_s13] sm:$0xff] %v862_v57  ;;  %881 = vxpose.xlu0.b32.start.end [1/1] (short) %v862_v57, 128  ;;  %1976 = vmatprep.subr.mxu0 %v862_v57 }
 0x555   : > { %2002 = vmatprep.subr.mxu1 %v862_v57  ;;  %1977 = vmatpush3.msra.mxu0 %v862_v57 }
 0x556   : > { %2003 = vmatpush3.msra.mxu1 %v862_v57  ;;  %v875_v57 = vld [vmem:[%s2325_s6 + $0x50] sm:$0xff] }
 0x591   : > { %1156 = vxpose.xlu0.b32.start.end [1/1] (short) %v2480_v50, 128 }
 0x5d4   : > { %v897_v44 = vpop.trf.xlu0 }
 0x5d5   : > { %1978 = vmatprep.mubr.msk.f32.mxu0 %vm913_vm8, %v897_v44 }
 0x5d8   : > { %v898_v45 = vpop.trf.xlu0 }
 0x5d9   : > { %1979 = vmatmul.mubr.msk.f32.vlgmr.msra.gmra.mrb[6].mxu0 %vm913_vm8, %v898_v45 }
 0x5dc   : > { %v899_v58 = vpop.trf.xlu0 }
 0x5dd   : > { %1981 = vmatprep.mubr.msk.f32.mxu0 %vm913_vm8, %v899_v58 }
 0x5e0   : > { %v900_v8 = vpop.trf.xlu0 }
 0x5e1   : > { %1982 = vmatmul.mubr.msk.f32.gmra.mrb[8].mxu0 %vm913_vm8, %v900_v8 }
 0x5e4   : > { %v901_v59 = vpop.trf.xlu0 }
 0x5e5   : > { %1984 = vmatprep.mubr.msk.f32.mxu0 %vm913_vm8, %v901_v59  ;;  %v878_v59 = vld [vmem:[%s2325_s6 + $0x68] sm:$0xff] }
 0x5e8   : > { %v902_v60 = vpop.trf.xlu0 }
 0x5e9   : > { %1985 = vmatmul.mubr.msk.f32.gmra.mrb[10].mxu0 %vm913_vm8, %v902_v60  ;;  %v877_v60 = vld [vmem:[%s2325_s6 + $0x60] sm:$0xff] }
 0x5ec   : > { %v903_v50 = vpop.trf.xlu0 }
 0x5ed   : > { %1987 = vmatprep.mubr.msk.f32.mxu0 %vm913_vm8, %v903_v50 }
 0x5f0   : > { %v904_v61 = vpop.trf.xlu0 }
 0x5f1   : > { %1988 = vmatmul.mubr.msk.f32.gmra.mrb[12].mxu0 %vm913_vm8, %v904_v61 }
 0x5f4   : > { %v905_v62 = vpop.trf.xlu0 }
 0x5f5   : > { %1990 = vmatprep.mubr.msk.f32.mxu0 %vm913_vm8, %v905_v62 }
 0x5f8   : > { %v906_v63 = vpop.trf.xlu0 }
 0x5f9   : > { %1991 = vmatmul.mubr.msk.f32.gmra.mrb[14].mxu0 %vm913_vm8, %v906_v63 }
 0x5fc   : > { %v907_v0 = vpop.trf.xlu0 }
 0x5fd   : > { %1993 = vmatprep.mubr.msk.f32.mxu0 %vm913_vm8, %v907_v0  ;;  %v880_v0 = vld [vmem:[%s2325_s6 + $0x78] sm:$0xff] }
 0x600   : > { %v908_v1 = vpop.trf.xlu0 }
 0x601   : > { %1994 = vmatmul.mubr.msk.f32.gmra.mrb[16].mxu0 %vm913_vm8, %v908_v1  ;;  %v879_v1 = vld [vmem:[%s2325_s6 + $0x70] sm:$0xff] }
 0x604   : > { %v909_v2 = vpop.trf.xlu0 }
 0x605   : > { %1996 = vmatprep.mubr.msk.f32.mxu0 %vm913_vm8, %v909_v2 }
 0x608   : > { %v910_v3 = vpop.trf.xlu0 }
 0x609   : > { %1997 = vmatmul.mubr.msk.f32.gmra.mrb[18].mxu0 %vm913_vm8, %v910_v3 }
 0x60c   : > { %v911_v4 = vpop.trf.xlu0 }
 0x60d   : > { %1999 = vmatprep.mubr.msk.f32.mxu0 %vm913_vm8, %v911_v4 }
 0x610   : > { %v912_v6 = vpop.trf.xlu0 }
 0x611   : > { %2000 = vmatmul.mubr.msk.f32.gmra.mrb[20].mxu0 %vm913_vm8, %v912_v6 }
 0x614   : > { %v1172_v7 = vpop.trf.xlu0 }
 0x615   : > { %2004 = vmatprep.mubr.msk.f32.mxu1 %vm913_vm8, %v1172_v7  ;;  %v1580_v7 = vld [vmem:[%s2325_s6 + $0x88] sm:$0xff] }
 0x618   : > { %v1173_v9 = vpop.trf.xlu0 }
 0x619   : > { %2005 = vmatmul.mubr.msk.f32.vlgmr.msra.gmra.mrb[6].mxu1 %vm913_vm8, %v1173_v9  ;;  %v1579_v9 = vld [vmem:[%s2325_s6 + $0x80] sm:$0xff] }
 0x61c   : > { %v1174_v10 = vpop.trf.xlu0 }
 0x61d   : > { %2007 = vmatprep.mubr.msk.f32.mxu1 %vm913_vm8, %v1174_v10 }
 0x620   : > { %v1175_v11 = vpop.trf.xlu0 }
 0x621   : > { %2008 = vmatmul.mubr.msk.f32.gmra.mrb[8].mxu1 %vm913_vm8, %v1175_v11 }
 0x624   : > { %v1176_v12 = vpop.trf.xlu0 }
 0x625   : > { %2010 = vmatprep.mubr.msk.f32.mxu1 %vm913_vm8, %v1176_v12 }
 0x628   : > { %v1177_v13 = vpop.trf.xlu0 }
 0x629   : > { %2011 = vmatmul.mubr.msk.f32.gmra.mrb[10].mxu1 %vm913_vm8, %v1177_v13 }
 0x62c   : > { %v1178_v14 = vpop.trf.xlu0 }
 0x62d   : > { %2013 = vmatprep.mubr.msk.f32.mxu1 %vm913_vm8, %v1178_v14  ;;  %v1582_v14 = vld [vmem:[%s2325_s6 + $0x98] sm:$0xff] }
 0x630   : > { %v1179_v15 = vpop.trf.xlu0 }
 0x631   : > { %2014 = vmatmul.mubr.msk.f32.gmra.mrb[12].mxu1 %vm913_vm8, %v1179_v15  ;;  %v1581_v15 = vld [vmem:[%s2325_s6 + $0x90] sm:$0xff] }
 0x634   : > { %v1180_v16 = vpop.trf.xlu0 }
 0x635   : > { %2016 = vmatprep.mubr.msk.f32.mxu1 %vm913_vm8, %v1180_v16 }
 0x638   : > { %v1181_v17 = vpop.trf.xlu0 }
 0x639   : > { %2017 = vmatmul.mubr.msk.f32.gmra.mrb[14].mxu1 %vm913_vm8, %v1181_v17 }
 0x63c   : > { %v1182_v18 = vpop.trf.xlu0 }
 0x63d   : > { %2019 = vmatprep.mubr.msk.f32.mxu1 %vm913_vm8, %v1182_v18 }
 0x640   : > { %v1183_v19 = vpop.trf.xlu0 }
 0x641   : > { %2020 = vmatmul.mubr.msk.f32.gmra.mrb[16].mxu1 %vm913_vm8, %v1183_v19 }
 0x644   : > { %v1184_v20 = vpop.trf.xlu0 }
 0x645   : > { %2022 = vmatprep.mubr.msk.f32.mxu1 %vm913_vm8, %v1184_v20  ;;  %v1584_v20 = vld [vmem:[%s2325_s6 + $0xa8] sm:$0xff] }
 0x648   : > { %v1185_v21 = vpop.trf.xlu0 }
 0x649   : > { %2023 = vmatmul.mubr.msk.f32.gmra.mrb[18].mxu1 %vm913_vm8, %v1185_v21  ;;  %v1583_v21 = vld [vmem:[%s2325_s6 + $0xa0] sm:$0xff] }
 0x64c   : > { %v1186_v22 = vpop.trf.xlu0 }
 0x64d   : > { %2025 = vmatprep.mubr.msk.f32.mxu1 %vm913_vm8, %v1186_v22 }
 0x650   : > { %v1187_v23 = vpop.trf.xlu0 }
 0x651   : > { %2026 = vmatmul.mubr.msk.f32.gmra.mrb[20].mxu1 %vm913_vm8, %v1187_v23 }
 0x6ac   : > { %v1980_v26 = vpop.f32.mrb[6].mxu0 }
 0x6ad   : > { %v1108_v27 = vadd.f32 %v1980_v26, %v866_v24  ;;  %v1028_v28 = vpop.f32.mrb[7].mxu0  ;;  %v1586_v26 = vld [vmem:[%s2325_s6 + $0xb8] sm:$0xff] }
 0x6ae   : > { %v1107_v29 = vadd.f32 %v1028_v28, %v865_v25 }
 0x6af   : > { %1124 = vst [vmem:[%s2325_s6 + $0x8] sm:$0xff] %v1108_v27  ;;  %v1585_v27 = vld [vmem:[%s2325_s6 + $0xb0] sm:$0xff] }
 0x6b0   : > { %1123 = vst [vmem:[%s2325_s6] sm:$0xff] %v1107_v29 }
 0x6b4   : > { %v1983_v32 = vpop.f32.mrb[8].mxu0 }
 0x6b5   : > { %v1110_v33 = vadd.f32 %v1983_v32, %v868_v30  ;;  %v1038_v34 = vpop.f32.mrb[9].mxu0  ;;  %v1588_v32 = vld [vmem:[%s2325_s6 + $0xc8] sm:$0xff] }
 0x6b6   : > { %v1109_v35 = vadd.f32 %v1038_v34, %v867_v31 }
 0x6b7   : > { %1126 = vst [vmem:[%s2325_s6 + $0x18] sm:$0xff] %v1110_v33  ;;  %v1587_v33 = vld [vmem:[%s2325_s6 + $0xc0] sm:$0xff] }
 0x6b8   : > { %1125 = vst [vmem:[%s2325_s6 + $0x10] sm:$0xff] %v1109_v35 }
 0x6bc   : > { %v1986_v38 = vpop.f32.mrb[10].mxu0 }
 0x6bd   : > { %v1112_v39 = vadd.f32 %v1986_v38, %v870_v36  ;;  %v1048_v40 = vpop.f32.mrb[11].mxu0  ;;  %v1590_v38 = vld [vmem:[%s2325_s6 + $0xd8] sm:$0xff] }
 0x6be   : > { %v1111_v41 = vadd.f32 %v1048_v40, %v869_v37 }
 0x6bf   : > { %1128 = vst [vmem:[%s2325_s6 + $0x28] sm:$0xff] %v1112_v39  ;;  %v1589_v39 = vld [vmem:[%s2325_s6 + $0xd0] sm:$0xff] }
 0x6c0   : > { %1127 = vst [vmem:[%s2325_s6 + $0x20] sm:$0xff] %v1111_v41 }
 0x6c4   : > { %v1989_v46 = vpop.f32.mrb[12].mxu0 }
 0x6c5   : > { %v1114_v5 = vadd.f32 %v1989_v46, %v872_v42  ;;  %v1058_v47 = vpop.f32.mrb[13].mxu0  ;;  %v1592_v46 = vld [vmem:[%s2325_s6 + $0xe8] sm:$0xff] }
 0x6c6   : > { %v1113_v48 = vadd.f32 %v1058_v47, %v871_v43 }
 0x6c7   : > { %1130 = vst [vmem:[%s2325_s6 + $0x38] sm:$0xff] %v1114_v5  ;;  %v1591_v5 = vld [vmem:[%s2325_s6 + $0xe0] sm:$0xff] }
 0x6c8   : > { %1129 = vst [vmem:[%s2325_s6 + $0x30] sm:$0xff] %v1113_v48 }
 0x6cc   : > { %v1992_v52 = vpop.f32.mrb[14].mxu0 }
 0x6cd   : > { %v1116_v53 = vadd.f32 %v1992_v52, %v874_v49  ;;  %v1068_v54 = vpop.f32.mrb[15].mxu0  ;;  %v1594_v52 = vld [vmem:[%s2325_s6 + $0xf8] sm:$0xff] }
 0x6ce   : > { %v1115_v55 = vadd.f32 %v1068_v54, %v873_v51 }
 0x6cf   : > { %1132 = vst [vmem:[%s2325_s6 + $0x48] sm:$0xff] %v1116_v53  ;;  %v1593_v53 = vld [vmem:[%s2325_s6 + $0xf0] sm:$0xff] }
 0x6d0   : > { %1131 = vst [vmem:[%s2325_s6 + $0x40] sm:$0xff] %v1115_v55 }
 0x6d4   : > { %v1995_v44 = vpop.f32.mrb[16].mxu0 }
 0x6d5   : > { %v1118_v45 = vadd.f32 %v1995_v44, %v876_v56  ;;  %v1078_v58 = vpop.f32.mrb[17].mxu0 }
 0x6d6   : > { %v1117_v8 = vadd.f32 %v1078_v58, %v875_v57 }
 0x6d7   : > { %1134 = vst [vmem:[%s2325_s6 + $0x58] sm:$0xff] %v1118_v45 }
 0x6d8   : > { %1133 = vst [vmem:[%s2325_s6 + $0x50] sm:$0xff] %v1117_v8 }
 0x6dc   : > { %v1998_v50 = vpop.f32.mrb[18].mxu0 }
 0x6dd   : > { %v1120_v61 = vadd.f32 %v1998_v50, %v878_v59  ;;  %v1088_v62 = vpop.f32.mrb[19].mxu0 }
 0x6de   : > { %v1119_v63 = vadd.f32 %v1088_v62, %v877_v60 }
 0x6df   : > { %1136 = vst [vmem:[%s2325_s6 + $0x68] sm:$0xff] %v1120_v61 }
 0x6e0   : > { %1135 = vst [vmem:[%s2325_s6 + $0x60] sm:$0xff] %v1119_v63 }
 0x6e4   : > { %v2001_v2 = vpop.f32.mrb[20].mxu0 }
 0x6e5   : > { %v1122_v3 = vadd.f32 %v2001_v2, %v880_v0  ;;  %v1098_v4 = vpop.f32.mrb[21].mxu0 }
 0x6e6   : > { %v1121_v6 = vadd.f32 %v1098_v4, %v879_v1 }
 0x6e7   : > { %1138 = vst [vmem:[%s2325_s6 + $0x78] sm:$0xff] %v1122_v3 }
 0x6e8   : > { %1137 = vst [vmem:[%s2325_s6 + $0x70] sm:$0xff] %v1121_v6 }
 0x6ec   : > { %v2006_v10 = vpop.f32.mrb[6].mxu1 }
 0x6ed   : > { %v1382_v11 = vadd.f32 %v2006_v10, %v1580_v7  ;;  %v1302_v12 = vpop.f32.mrb[7].mxu1 }
 0x6ee   : > { %v1381_v13 = vadd.f32 %v1579_v9, %v1302_v12 }
 0x6ef   : > { %1612 = vst [vmem:[%s2325_s6 + $0x88] sm:$0xff] %v1382_v11 }
 0x6f0   : > { %1611 = vst [vmem:[%s2325_s6 + $0x80] sm:$0xff] %v1381_v13 }
 0x6f4   : > { %v2009_v16 = vpop.f32.mrb[8].mxu1 }
 0x6f5   : > { %v1384_v17 = vadd.f32 %v2009_v16, %v1582_v14  ;;  %v1312_v18 = vpop.f32.mrb[9].mxu1 }
 0x6f6   : > { %v1383_v19 = vadd.f32 %v1581_v15, %v1312_v18 }
 0x6f7   : > { %1614 = vst [vmem:[%s2325_s6 + $0x98] sm:$0xff] %v1384_v17 }
 0x6f8   : > { %1613 = vst [vmem:[%s2325_s6 + $0x90] sm:$0xff] %v1383_v19 }
 0x6fc   : > { %v2012_v22 = vpop.f32.mrb[10].mxu1 }
 0x6fd   : > { %v1386_v23 = vadd.f32 %v2012_v22, %v1584_v20  ;;  %v1322_v24 = vpop.f32.mrb[11].mxu1 }
 0x6fe   : > { %v1385_v25 = vadd.f32 %v1583_v21, %v1322_v24 }
 0x6ff   : > { %1616 = vst [vmem:[%s2325_s6 + $0xa8] sm:$0xff] %v1386_v23 }
 0x700   : > { %1615 = vst [vmem:[%s2325_s6 + $0xa0] sm:$0xff] %v1385_v25 }
 0x704   : > { %v2015_v28 = vpop.f32.mrb[12].mxu1 }
 0x705   : > { %v1388_v29 = vadd.f32 %v2015_v28, %v1586_v26  ;;  %v1332_v30 = vpop.f32.mrb[13].mxu1 }
 0x706   : > { %v1387_v31 = vadd.f32 %v1585_v27, %v1332_v30 }
 0x707   : > { %1618 = vst [vmem:[%s2325_s6 + $0xb8] sm:$0xff] %v1388_v29 }
 0x708   : > { %1617 = vst [vmem:[%s2325_s6 + $0xb0] sm:$0xff] %v1387_v31 }
 0x70c   : > { %v2018_v34 = vpop.f32.mrb[14].mxu1 }
 0x70d   : > { %v1390_v35 = vadd.f32 %v2018_v34, %v1588_v32  ;;  %v1342_v36 = vpop.f32.mrb[15].mxu1 }
 0x70e   : > { %v1389_v37 = vadd.f32 %v1587_v33, %v1342_v36 }
 0x70f   : > { %1620 = vst [vmem:[%s2325_s6 + $0xc8] sm:$0xff] %v1390_v35 }
 0x710   : > { %1619 = vst [vmem:[%s2325_s6 + $0xc0] sm:$0xff] %v1389_v37 }
 0x714   : > { %v2021_v40 = vpop.f32.mrb[16].mxu1 }
 0x715   : > { %v1392_v41 = vadd.f32 %v2021_v40, %v1590_v38  ;;  %v1352_v42 = vpop.f32.mrb[17].mxu1 }
 0x716   : > { %v1391_v43 = vadd.f32 %v1589_v39, %v1352_v42 }
 0x717   : > { %1622 = vst [vmem:[%s2325_s6 + $0xd8] sm:$0xff] %v1392_v41 }
 0x718   : > { %1621 = vst [vmem:[%s2325_s6 + $0xd0] sm:$0xff] %v1391_v43 }
 0x71c   : > { %v2024_v47 = vpop.f32.mrb[18].mxu1 }
 0x71d   : > { %v1394_v48 = vadd.f32 %v2024_v47, %v1592_v46  ;;  %v1362_v49 = vpop.f32.mrb[19].mxu1 }
 0x71e   : > { %v1393_v51 = vadd.f32 %v1591_v5, %v1362_v49 }
 0x71f   : > { %1624 = vst [vmem:[%s2325_s6 + $0xe8] sm:$0xff] %v1394_v48 }
 0x720   : > { %1623 = vst [vmem:[%s2325_s6 + $0xe0] sm:$0xff] %v1393_v51 }
 0x724   : > { %v2027_v54 = vpop.f32.mrb[20].mxu1 }
 0x725   : > { %v1396_v55 = vadd.f32 %v2027_v54, %v1594_v52  ;;  %v1372_v56 = vpop.f32.mrb[21].mxu1 }
 0x726   : > { %v1395_v57 = vadd.f32 %v1593_v53, %v1372_v56 }
 0x727   : > { %1626 = vst [vmem:[%s2325_s6 + $0xf8] sm:$0xff] %v1396_v55 }
 0x728   : > { %1625 = vst [vmem:[%s2325_s6 + $0xf0] sm:$0xff] %v1395_v57 }
 0x729 PF: > { %s15_s19 = sadd.s32 1, %s2254_s19   ;;  %s2864_s15 = smov %s2246_s17 }
 0x72a   : > { %p12_p8 = scmp.ge.s32.totalorder %s15_s19, 34   ;;  %s2865_s16 = smov %s2250_s18 }
 0x72b   : > { %s2866_s17 = smov %s2869_s20  ;;  %s2867_s18 = smov %s2873_s21 }
 0x72c   :  { %14 = sbr.rel (!%p12_p8) target bundleno = 3 (0x3), region = 82 }

</bundles_post_ra>
